<compile_context>
chip_gen: v7x
topology: tpu7x:2x2x1
jax: 0.10.0
libtpu: 0.0.40
codegen_flags: <defaults>
</compile_context>

<pallas_src>
import jax
import jax.numpy as jnp
from jax.experimental import pallas as pl
from jax.experimental.pallas import tpu as pltpu

INPUT_SIZE = 4      # CartPole-v1 observation_space.shape[0]
HIDDEN1 = 64
HIDDEN2 = 128
OUTPUT_SIZE = 2     # CartPole-v1 action_space.n

H1_PAD = 128        # hidden1 padded to a full lane width
OUT_PAD = 128       # output padded to a full lane width (sliced in wrapper)
MAX_TILE_B = 1024   # batch tile; comfortably within VMEM on v5e/v6e/v7x


def _qnet_kernel(x_ref, w1_ref, b1_ref, w2_ref, b2_ref, w3_ref, b3_ref, o_ref):
    x = x_ref[...]                                           # (TB, 4)

    # Layer 1 on the VPU: K=4 would be ~97% padding waste on the MXU.
    h1 = (x[:, 0:1] * w1_ref[0:1, :]
          + x[:, 1:2] * w1_ref[1:2, :]
          + x[:, 2:3] * w1_ref[2:3, :]
          + x[:, 3:4] * w1_ref[3:4, :]
          + b1_ref[...])                                     # (TB, 128), lane-dense
    h1 = jnp.maximum(h1, 0.0)

    # Layers 2 and 3 on the MXU, f32 accumulation.
    h2 = jnp.dot(h1, w2_ref[...], preferred_element_type=jnp.float32) + b2_ref[...]
    h2 = jnp.maximum(h2, 0.0)                                # (TB, 128)
    out = jnp.dot(h2, w3_ref[...], preferred_element_type=jnp.float32) + b3_ref[...]
    o_ref[...] = out.astype(o_ref.dtype)                     # (TB, 128), unmasked store


def _pad_params(params):
    """Zero-pad weights/biases to lane-dense kernel layout (numerically exact)."""
    w1 = jnp.zeros((INPUT_SIZE, H1_PAD), jnp.float32).at[:, :HIDDEN1].set(params["w1"])
    b1 = jnp.zeros((1, H1_PAD), jnp.float32).at[:, :HIDDEN1].set(params["b1"])
    w2 = jnp.zeros((H1_PAD, HIDDEN2), jnp.float32).at[:HIDDEN1, :].set(params["w2"])
    b2 = params["b2"].astype(jnp.float32)                    # already (1, 128)
    w3 = jnp.zeros((HIDDEN2, OUT_PAD), jnp.float32).at[:, :OUTPUT_SIZE].set(params["w3"])
    b3 = jnp.zeros((1, OUT_PAD), jnp.float32).at[:, :OUTPUT_SIZE].set(params["b3"])
    return w1, b1, w2, b2, w3, b3


def qnet_forward(x, params):
    """Fused QNet forward.

    x: (B, INPUT_SIZE) float32
    params: dict with w1 (4,64), b1 (1,64), w2 (64,128), b2 (1,128),
            w3 (128,2), b3 (1,2)   (i.e. PyTorch weights transposed to (in, out))
    returns: (B, OUTPUT_SIZE) float32
    """
    B = x.shape[0]
    w1, b1, w2, b2, w3, b3 = _pad_params(params)

    # Tile the batch; keep TILE_B sublane-aligned and pad B up to a tile multiple.
    tile_b = min(MAX_TILE_B, max(8, ((B + 7) // 8) * 8))
    b_pad = ((B + tile_b - 1) // tile_b) * tile_b
    if b_pad != B:
        x = jnp.pad(x, ((0, b_pad - B), (0, 0)))
    grid = (b_pad // tile_b,)

    resident = lambda shape: pl.BlockSpec(shape, lambda i: (0, 0))  # weights stay in VMEM

    weight_bytes = 4 * (w1.size + b1.size + w2.size + b2.size + w3.size + b3.size)
    cost = pl.CostEstimate(
        flops=2 * b_pad * (INPUT_SIZE * H1_PAD + H1_PAD * HIDDEN2 + HIDDEN2 * OUT_PAD),
        transcendentals=0,
        bytes_accessed=b_pad * INPUT_SIZE * 4 + b_pad * OUT_PAD * 4 + weight_bytes,
    )

    out = pl.pallas_call(
        _qnet_kernel,
        out_shape=jax.ShapeDtypeStruct((b_pad, OUT_PAD), jnp.float32),
        grid=grid,
        in_specs=[
            pl.BlockSpec((tile_b, INPUT_SIZE), lambda i: (i, 0)),   # streamed batch tile
            resident(w1.shape), resident(b1.shape),
            resident(w2.shape), resident(b2.shape),
            resident(w3.shape), resident(b3.shape),
        ],
        out_specs=pl.BlockSpec((tile_b, OUT_PAD), lambda i: (i, 0)),
        compiler_params=pltpu.CompilerParams(
            dimension_semantics=("parallel",),          # shard batch across TCs on v7x
            vmem_limit_bytes=32 * 1024 * 1024,          # explicit; safe on v7x's 64 MiB
        ),
        cost_estimate=cost,
    )(x, w1, b1, w2, b2, w3, b3)

    return out[:B, :OUTPUT_SIZE]


def init_params(key):
    """Deterministic init mimicking PyTorch nn.Linear default (uniform(-k, k), k=1/sqrt(fan_in))."""
    ks = jax.random.split(key, 6)

    def linear(kw, kb, fan_in, fan_out):
        bound = 1.0 / jnp.sqrt(fan_in)
        w = jax.random.uniform(kw, (fan_in, fan_out), jnp.float32, -bound, bound)
        b = jax.random.uniform(kb, (1, fan_out), jnp.float32, -bound, bound)
        return w, b

    w1, b1 = linear(ks[0], ks[1], INPUT_SIZE, HIDDEN1)
    w2, b2 = linear(ks[2], ks[3], HIDDEN1, HIDDEN2)
    w3, b3 = linear(ks[4], ks[5], HIDDEN2, OUTPUT_SIZE)
    return {"w1": w1, "b1": b1, "w2": w2, "b2": b2, "w3": w3, "b3": b3}


if __name__ == "__main__":
    key = jax.random.PRNGKey(0)
    k_params, k_x = jax.random.split(key)

    params = init_params(k_params)
    batch = 8
    x = jax.random.normal(k_x, (batch, INPUT_SIZE), jnp.float32)

    out = qnet_forward(x, params)
    out = jax.block_until_ready(out)

    # Reference check in plain JAX (same math, unpadded weights).
    ref = jnp.maximum(x @ params["w1"] + params["b1"], 0.0)
    ref = jnp.maximum(ref @ params["w2"] + params["b2"], 0.0)
    ref = ref @ params["w3"] + params["b3"]
    assert out.shape == (batch, OUTPUT_SIZE)
    assert jnp.allclose(out, ref, atol=1e-5, rtol=1e-5)

    # Also exercise a non-tile-multiple, larger batch to verify the grid/padding path.
    xb = jax.random.normal(jax.random.PRNGKey(1), (2000, INPUT_SIZE), jnp.float32)
    outb = jax.block_until_ready(qnet_forward(xb, params))
    refb = jnp.maximum(xb @ params["w1"] + params["b1"], 0.0)
    refb = jnp.maximum(refb @ params["w2"] + params["b2"], 0.0)
    refb = refb @ params["w3"] + params["b3"]
    assert outb.shape == (2000, OUTPUT_SIZE)
    assert jnp.allclose(outb, refb, atol=1e-5, rtol=1e-5)

    print("KERNEL_OK")
</pallas_src>

<mosaic_0001>
module attributes {stable_mosaic.version = 11 : i64} {
  func.func @_qnet_kernel(%arg0: i32, %arg1: memref<8x4xf32, #tpu.memory_space<vmem>>, %arg2: memref<4x128xf32, #tpu.memory_space<vmem>>, %arg3: memref<1x128xf32, #tpu.memory_space<vmem>>, %arg4: memref<128x128xf32, #tpu.memory_space<vmem>>, %arg5: memref<1x128xf32, #tpu.memory_space<vmem>>, %arg6: memref<128x128xf32, #tpu.memory_space<vmem>>, %arg7: memref<1x128xf32, #tpu.memory_space<vmem>>, %arg8: memref<8x128xf32, #tpu.memory_space<vmem>>) attributes {dimension_semantics = [#tpu.dimension_semantics<parallel>], iteration_bounds = array<i64: 1>, scalar_prefetch = 0 : i64, scratch_operands = 0 : i64, tpu.core_type = #tpu.core_type<tc>, window_params = [{transform_indices = @transform_0, window_bounds = array<i64: 8, 4>}, {pipeline_mode = #tpu.pipeline_mode<synchronous>, transform_indices = @transform_1, window_bounds = array<i64: 4, 128>}, {pipeline_mode = #tpu.pipeline_mode<synchronous>, transform_indices = @transform_2, window_bounds = array<i64: 1, 128>}, {pipeline_mode = #tpu.pipeline_mode<synchronous>, transform_indices = @transform_3, window_bounds = array<i64: 128, 128>}, {pipeline_mode = #tpu.pipeline_mode<synchronous>, transform_indices = @transform_4, window_bounds = array<i64: 1, 128>}, {pipeline_mode = #tpu.pipeline_mode<synchronous>, transform_indices = @transform_5, window_bounds = array<i64: 128, 128>}, {pipeline_mode = #tpu.pipeline_mode<synchronous>, transform_indices = @transform_6, window_bounds = array<i64: 1, 128>}, {transform_indices = @transform_7, window_bounds = array<i64: 8, 128>}]} {
    %c0 = arith.constant 0 : index
    %c0_0 = arith.constant 0 : index
    %0 = vector.load %arg1[%c0, %c0_0] : memref<8x4xf32, #tpu.memory_space<vmem>>, vector<8x4xf32>
    %1 = vector.extract_strided_slice %0 {offsets = [0, 0], sizes = [8, 1], strides = [1, 1]} : vector<8x4xf32> to vector<8x1xf32>
    %c0_1 = arith.constant 0 : index
    %c0_2 = arith.constant 0 : index
    %2 = vector.load %arg2[%c0_1, %c0_2] : memref<4x128xf32, #tpu.memory_space<vmem>>, vector<1x128xf32>
    %3 = vector.broadcast %1 : vector<8x1xf32> to vector<8x128xf32>
    %4 = vector.broadcast %2 : vector<1x128xf32> to vector<8x128xf32>
    %5 = arith.mulf %3, %4 : vector<8x128xf32>
    %6 = vector.extract_strided_slice %0 {offsets = [0, 1], sizes = [8, 1], strides = [1, 1]} : vector<8x4xf32> to vector<8x1xf32>
    %c1 = arith.constant 1 : index
    %c0_3 = arith.constant 0 : index
    %7 = vector.load %arg2[%c1, %c0_3] : memref<4x128xf32, #tpu.memory_space<vmem>>, vector<1x128xf32>
    %8 = vector.broadcast %6 : vector<8x1xf32> to vector<8x128xf32>
    %9 = vector.broadcast %7 : vector<1x128xf32> to vector<8x128xf32>
    %10 = arith.mulf %8, %9 : vector<8x128xf32>
    %11 = arith.addf %5, %10 : vector<8x128xf32>
    %12 = vector.extract_strided_slice %0 {offsets = [0, 2], sizes = [8, 1], strides = [1, 1]} : vector<8x4xf32> to vector<8x1xf32>
    %c2 = arith.constant 2 : index
    %c0_4 = arith.constant 0 : index
    %13 = vector.load %arg2[%c2, %c0_4] : memref<4x128xf32, #tpu.memory_space<vmem>>, vector<1x128xf32>
    %14 = vector.broadcast %12 : vector<8x1xf32> to vector<8x128xf32>
    %15 = vector.broadcast %13 : vector<1x128xf32> to vector<8x128xf32>
    %16 = arith.mulf %14, %15 : vector<8x128xf32>
    %17 = arith.addf %11, %16 : vector<8x128xf32>
    %18 = vector.extract_strided_slice %0 {offsets = [0, 3], sizes = [8, 1], strides = [1, 1]} : vector<8x4xf32> to vector<8x1xf32>
    %c3 = arith.constant 3 : index
    %c0_5 = arith.constant 0 : index
    %19 = vector.load %arg2[%c3, %c0_5] : memref<4x128xf32, #tpu.memory_space<vmem>>, vector<1x128xf32>
    %20 = vector.broadcast %18 : vector<8x1xf32> to vector<8x128xf32>
    %21 = vector.broadcast %19 : vector<1x128xf32> to vector<8x128xf32>
    %22 = arith.mulf %20, %21 : vector<8x128xf32>
    %23 = arith.addf %17, %22 : vector<8x128xf32>
    %c0_6 = arith.constant 0 : index
    %c0_7 = arith.constant 0 : index
    %24 = vector.load %arg3[%c0_6, %c0_7] : memref<1x128xf32, #tpu.memory_space<vmem>>, vector<1x128xf32>
    %25 = vector.broadcast %24 : vector<1x128xf32> to vector<8x128xf32>
    %26 = arith.addf %23, %25 : vector<8x128xf32>
    %cst = arith.constant 0.000000e+00 : f32
    %27 = vector.broadcast %cst : f32 to vector<8x128xf32>
    %28 = arith.maximumf %26, %27 : vector<8x128xf32>
    %c0_8 = arith.constant 0 : index
    %c0_9 = arith.constant 0 : index
    %29 = vector.load %arg4[%c0_8, %c0_9] : memref<128x128xf32, #tpu.memory_space<vmem>>, vector<128x128xf32>
    %cst_10 = arith.constant dense<0.000000e+00> : vector<8x128xf32>
    %30 = tpu.matmul %28, %29, %cst_10 {dimension_numbers = #tpu.dot_dimension_numbers<[1], [0], [0], [1], [0, 0, 1, 1], [], []>} : vector<8x128xf32>, vector<128x128xf32>, vector<8x128xf32> -> vector<8x128xf32>
    %c0_11 = arith.constant 0 : index
    %c0_12 = arith.constant 0 : index
    %31 = vector.load %arg5[%c0_11, %c0_12] : memref<1x128xf32, #tpu.memory_space<vmem>>, vector<1x128xf32>
    %32 = vector.broadcast %31 : vector<1x128xf32> to vector<8x128xf32>
    %33 = arith.addf %30, %32 : vector<8x128xf32>
    %cst_13 = arith.constant 0.000000e+00 : f32
    %34 = vector.broadcast %cst_13 : f32 to vector<8x128xf32>
    %35 = arith.maximumf %33, %34 : vector<8x128xf32>
    %c0_14 = arith.constant 0 : index
    %c0_15 = arith.constant 0 : index
    %36 = vector.load %arg6[%c0_14, %c0_15] : memref<128x128xf32, #tpu.memory_space<vmem>>, vector<128x128xf32>
    %cst_16 = arith.constant dense<0.000000e+00> : vector<8x128xf32>
    %37 = tpu.matmul %35, %36, %cst_16 {dimension_numbers = #tpu.dot_dimension_numbers<[1], [0], [0], [1], [0, 0, 1, 1], [], []>} : vector<8x128xf32>, vector<128x128xf32>, vector<8x128xf32> -> vector<8x128xf32>
    %c0_17 = arith.constant 0 : index
    %c0_18 = arith.constant 0 : index
    %38 = vector.load %arg7[%c0_17, %c0_18] : memref<1x128xf32, #tpu.memory_space<vmem>>, vector<1x128xf32>
    %39 = vector.broadcast %38 : vector<1x128xf32> to vector<8x128xf32>
    %40 = arith.addf %37, %39 : vector<8x128xf32>
    %c0_19 = arith.constant 0 : index
    %c0_20 = arith.constant 0 : index
    %41 = vector.load %arg8[%c0_19, %c0_20] : memref<8x128xf32, #tpu.memory_space<vmem>>, vector<8x128xf32>
    tpu.vector_store %arg8[%c0_19, %c0_20], %40 {strides = array<i32>} : memref<8x128xf32, #tpu.memory_space<vmem>>, vector<8x128xf32>,
    return
  }
  func.func @transform_0(%arg0: i32) -> (i32, i32) {
    %c0_i32 = arith.constant 0 : i32
    %c0_i32_0 = arith.constant 0 : i32
    return %arg0, %c0_i32 : i32, i32
  }
  func.func @transform_1(%arg0: i32) -> (i32, i32) {
    %c0_i32 = arith.constant 0 : i32
    %c0_i32_0 = arith.constant 0 : i32
    %c0_i32_1 = arith.constant 0 : i32
    return %c0_i32, %c0_i32_0 : i32, i32
  }
  func.func @transform_2(%arg0: i32) -> (i32, i32) {
    %c0_i32 = arith.constant 0 : i32
    %c0_i32_0 = arith.constant 0 : i32
    %c0_i32_1 = arith.constant 0 : i32
    return %c0_i32, %c0_i32_0 : i32, i32
  }
  func.func @transform_3(%arg0: i32) -> (i32, i32) {
    %c0_i32 = arith.constant 0 : i32
    %c0_i32_0 = arith.constant 0 : i32
    %c0_i32_1 = arith.constant 0 : i32
    return %c0_i32, %c0_i32_0 : i32, i32
  }
  func.func @transform_4(%arg0: i32) -> (i32, i32) {
    %c0_i32 = arith.constant 0 : i32
    %c0_i32_0 = arith.constant 0 : i32
    %c0_i32_1 = arith.constant 0 : i32
    return %c0_i32, %c0_i32_0 : i32, i32
  }
  func.func @transform_5(%arg0: i32) -> (i32, i32) {
    %c0_i32 = arith.constant 0 : i32
    %c0_i32_0 = arith.constant 0 : i32
    %c0_i32_1 = arith.constant 0 : i32
    return %c0_i32, %c0_i32_0 : i32, i32
  }
  func.func @transform_6(%arg0: i32) -> (i32, i32) {
    %c0_i32 = arith.constant 0 : i32
    %c0_i32_0 = arith.constant 0 : i32
    %c0_i32_1 = arith.constant 0 : i32
    return %c0_i32, %c0_i32_0 : i32, i32
  }
  func.func @transform_7(%arg0: i32) -> (i32, i32) {
    %c0_i32 = arith.constant 0 : i32
    %c0_i32_0 = arith.constant 0 : i32
    return %arg0, %c0_i32 : i32, i32
  }
}

</mosaic_0001>

<bundles_post_ra>
// kernel: tpu_custom_call.1
= control target key start
LH: loop header
LB: loop body
LE: loop exit
PB: predicated region body
PF: predicated region fallthrough
CT: control target
= control target key end

     0   :  { %12 = vsyncpa [#allocation3], 0  ;;  %s689_s0 = inlined_call_operand.vmem [shape: f32[8,4], index: 0, kind: input, shape index: {}]   ;;  %s690_s1 = inlined_call_operand.vmem [shape: f32[4,128], index: 1, kind: input, shape index: {}]   ;;  %s691_s2 = inlined_call_operand.vmem [shape: f32[1,128], index: 2, kind: input, shape index: {}]   ;;  %s692_s3 = inlined_call_operand.hbm [shape: f32[128,128], index: 3, kind: input, shape index: {}]   ;;  %s693_s4 = inlined_call_operand.vmem [shape: f32[1,128], index: 4, kind: input, shape index: {}]   ;;  %s694_s5 = inlined_call_operand.hbm [shape: f32[128,128], index: 5, kind: input, shape index: {}]   ;;  %s695_s6 = inlined_call_operand.vmem [shape: f32[1,128], index: 6, kind: input, shape index: {}]   ;;  %s696_s7 = inlined_call_operand.hbm [shape: f32[8,128], index: 7, kind: output, shape index: {}]  }
   0x1   :  { %13 = vsyncpa [#allocation6], 0 }
   0x2   :  { %14 = vsyncpa [#allocation4], 0  ;;  %s561_s24 = smov [#allocation2]   ;;  %s489_s28 = scalar_lea.hbm %s692_s3, 2048 }
   0x3   :  { %s26_s25 = sshll.u32 %s561_s24, 4  ;;  %p490_p0 = scmp.ne.s32.totalorder %s692_s3, %s489_s28  ;;  %s27_s25 = int_to_ptr.vmem [resolvable:$true] %s26_s25 }
   0x4   :  { %p493_p1 = scmp.lt.u32.totalorder %s489_s28, %s692_s3 }
   0x6   :  { %p495_p2 = pnand %p493_p1, %p490_p0 }
   0x8   :  { %498 = shalt.err (!%p495_p2)
}
   0x9   :  { %s499_s10 = scalar_lea.vmem %s27_s25, 2048  ;;  %p504_p4 = scmp.lt.s32.totalorder %s27_s25, %s27_s25 }
   0xa   :  { %p500_p3 = scmp.ne.s32.totalorder %s27_s25, %s499_s10  ;;  %p505_p5 = scmp.lt.s32.totalorder %s499_s10, %s499_s10 }
   0xc   :  { %p506_p6 = por %p505_p5, %p504_p4 }
   0xe   :  { %p507_p7 = pnand %p506_p6, %p500_p3 }
  0x10   :  { %510 = shalt.err (!%p507_p7)
}
  0x11   :  { %s562_s11 = smov 128   ;;  %s563_s12 = smov 8  }
  0x12   :  { %32 = dma.hbm_to_vmem [thread:$0]  %s692_s3, 2048, %s27_s25, [#allocation3], %s562_s11, %s562_s11, %s563_s12  }
  0x13   :  { %s564_s15 = smov [#allocation5]   ;;  %s511_s19 = scalar_lea.hbm %s694_s5, 2048 }
  0x14   :  { %s40_s16 = sshll.u32 %s564_s15, 4  ;;  %p512_p8 = scmp.ne.s32.totalorder %s694_s5, %s511_s19  ;;  %s41_s16 = int_to_ptr.vmem [resolvable:$true] %s40_s16 }
  0x15   :  { %p515_p9 = scmp.lt.u32.totalorder %s511_s19, %s694_s5 }
  0x17   :  { %p517_p10 = pnand %p515_p9, %p512_p8 }
  0x19   :  { %520 = shalt.err (!%p517_p10)
}
  0x1a   :  { %s521_s24 = scalar_lea.vmem %s41_s16, 2048  ;;  %p526_p12 = scmp.lt.s32.totalorder %s41_s16, %s41_s16 }
  0x1b   :  { %p522_p11 = scmp.ne.s32.totalorder %s41_s16, %s521_s24  ;;  %p527_p13 = scmp.lt.s32.totalorder %s521_s24, %s521_s24 }
  0x1d   :  { %p528_p0 = por %p527_p13, %p526_p12 }
  0x1f   :  { %p529_p1 = pnand %p528_p0, %p522_p11 }
  0x21   :  { %532 = shalt.err (!%p529_p1)
}
  0x22   :  { %46 = dma.hbm_to_vmem [thread:$0]  %s694_s5, 2048, %s41_s16, [#allocation6], %s562_s11, %s562_s11, %s563_s12  }
  0x23   :  { %555 = dma.done.wait [#allocation3], 2048  }
  0x24   :  { %556 = vsyncadd [#allocation3], 4294965248 }
  0x25   :  { %557 = dma.done.wait [#allocation6], 2048  }
  0x26   :  { %558 = vsyncadd [#allocation6], 4294965248  ;;  %v565_v0 = vmov 0   ;;  %v566_v1 = vmov 2   ;;  %v567_v2 = vmov 0.0|0.0   ;;  %v55_v3 = vld [vmem:[%s689_s0] sm:$0xff] }
  0x27   :  { %484 = vset.pattern.permute.xlu0 %v565_v0  ;;  %486 = vset.pattern.permute.xlu1 %v566_v1  ;;  %v109_v4 = vld [vmem:[#allocation2] sm:$0xff]  ;;  %v110_v5 = vld [vmem:[#allocation2 + $0x8] sm:$0xff]  ;;  %v111_v7 = vld [vmem:[#allocation2 + $0x10] sm:$0xff]  ;;  %v568_v12 = vmov 1   ;;  %v569_v13 = vmov 3   ;;  %vm570_vm0 = vmmov 0  }
  0x28   :  { %424 = vmatprep.subr.bf16.mxu0 %v567_v2  ;;  %448 = vmatprep.subr.bf16.mxu1 %v567_v2  ;;  %v425_v6 = vpack.c.bf16 %v110_v5, %v109_v4  ;;  %v112_v8 = vld [vmem:[#allocation2 + $0x18] sm:$0xff]  ;;  %v113_v10 = vld [vmem:[#allocation2 + $0x20] sm:$0xff]  ;;  %v114_v11 = vld [vmem:[#allocation2 + $0x28] sm:$0xff]  ;;  %v571_v20 = vmov 0.0  }
  0x29   :  { %59 = vperm.xlu0 %484, %v55_v3   ;;  %80 = vperm.xlu1 %486, %v55_v3   ;;  %v428_v9 = vpack.c.bf16 %v112_v8, %v111_v7  ;;  %v431_v14 = vpack.c.bf16 %v114_v11, %v113_v10  ;;  %v115_v15 = vld [vmem:[#allocation2 + $0x30] sm:$0xff]  ;;  %v116_v16 = vld [vmem:[#allocation2 + $0x38] sm:$0xff]  ;;  %v117_v18 = vld [vmem:[#allocation2 + $0x40] sm:$0xff] }
  0x2a   :  { %426 = vmatpush3.bf16.msra.mxu0 %v425_v6  ;;  %v434_v17 = vpack.c.bf16 %v116_v16, %v115_v15  ;;  %v118_v19 = vld [vmem:[#allocation2 + $0x48] sm:$0xff]  ;;  %386 = vmatprep.mubr.msk.f32.mxu0 %vm570_vm0, %v571_v20  ;;  %v119_v22 = vld [vmem:[#allocation2 + $0x50] sm:$0xff]  ;;  %v120_v23 = vld [vmem:[#allocation2 + $0x58] sm:$0xff] }
  0x2b   :  { %427 = vmatprep.subr.bf16.mxu0 %v567_v2  ;;  %421 = vmatprep.mubr.msk.f32.mxu1 %vm570_vm0, %v571_v20  ;;  %v437_v21 = vpack.c.bf16 %v118_v19, %v117_v18  ;;  %v203_v24 = vld [vmem:[#allocation5] sm:$0xff]  ;;  %v204_v25 = vld [vmem:[#allocation5 + $0x8] sm:$0xff]  ;;  %v205_v26 = vld [vmem:[#allocation5 + $0x10] sm:$0xff]  ;;  %v440_v27 = vpack.c.bf16 %v120_v23, %v119_v22 }
  0x2c   :  { %v449_v28 = vpack.c.bf16 %v204_v25, %v203_v24  ;;  %v206_v29 = vld [vmem:[#allocation5 + $0x18] sm:$0xff]  ;;  %v121_v30 = vld [vmem:[#allocation2 + $0x60] sm:$0xff]  ;;  %v122_v31 = vld [vmem:[#allocation2 + $0x68] sm:$0xff] }
  0x2d   :  { %485 = vset.pattern.permute.xlu0 %v568_v12  ;;  %487 = vset.pattern.permute.xlu1 %v569_v13  ;;  %v452_v32 = vpack.c.bf16 %v206_v29, %v205_v26  ;;  %v207_v33 = vld [vmem:[#allocation5 + $0x20] sm:$0xff]  ;;  %v208_v34 = vld [vmem:[#allocation5 + $0x28] sm:$0xff]  ;;  %v443_v35 = vpack.c.bf16 %v122_v31, %v121_v30  ;;  %v123_v36 = vld [vmem:[#allocation2 + $0x70] sm:$0xff] }
  0x2e   :  { %69 = vperm.xlu0 %485, %v55_v3   ;;  %91 = vperm.xlu1 %487, %v55_v3   ;;  %v124_v37 = vld [vmem:[#allocation2 + $0x78] sm:$0xff]  ;;  %v455_v38 = vpack.c.bf16 %v208_v34, %v207_v33  ;;  %v209_v39 = vld [vmem:[#allocation5 + $0x30] sm:$0xff]  ;;  %v211_v43 = vld [vmem:[#allocation5 + $0x40] sm:$0xff] }
  0x2f   :  { %429 = vmatpush3.bf16.msra.mxu0 %v428_v9  ;;  %450 = vmatpush3.bf16.msra.mxu1 %v449_v28  ;;  %v210_v40 = vld [vmem:[#allocation5 + $0x38] sm:$0xff]  ;;  %v446_v41 = vpack.c.bf16 %v124_v37, %v123_v36  ;;  %v212_v44 = vld [vmem:[#allocation5 + $0x48] sm:$0xff]  ;;  %v213_v46 = vld [vmem:[#allocation5 + $0x50] sm:$0xff] }
  0x30   :  { %430 = vmatprep.subr.bf16.mxu0 %v567_v2  ;;  %451 = vmatprep.subr.bf16.mxu1 %v567_v2  ;;  %v458_v42 = vpack.c.bf16 %v210_v40, %v209_v39  ;;  %v461_v45 = vpack.c.bf16 %v212_v44, %v211_v43  ;;  %v214_v47 = vld [vmem:[#allocation5 + $0x58] sm:$0xff]  ;;  %v215_v49 = vld [vmem:[#allocation5 + $0x60] sm:$0xff]  ;;  %v216_v50 = vld [vmem:[#allocation5 + $0x68] sm:$0xff] }
  0x31   :  { %v464_v48 = vpack.c.bf16 %v214_v47, %v213_v46  ;;  %v467_v51 = vpack.c.bf16 %v216_v50, %v215_v49  ;;  %v313_v54 = vld [vmem:[%s690_s1] ss:$0 sm:$0xff]  ;;  %v314_v55 = vld [vmem:[%s690_s1 + $0x1] ss:$0 sm:$0xff]  ;;  %v315_v56 = vld [vmem:[%s690_s1 + $0x2] ss:$0 sm:$0xff] }
  0x32   :  { %488 = vset.pattern.permute.xlu0 %v569_v13  ;;  %v316_v58 = vld [vmem:[%s690_s1 + $0x3] ss:$0 sm:$0xff]  ;;  %v217_v6 = vld [vmem:[#allocation5 + $0x70] sm:$0xff]  ;;  %v218_v7 = vld [vmem:[#allocation5 + $0x78] sm:$0xff] }
  0x33   :  { %432 = vmatpush3.bf16.msra.mxu0 %v431_v14  ;;  %453 = vmatpush3.bf16.msra.mxu1 %v452_v32  ;;  %v470_v8 = vpack.c.bf16 %v218_v7, %v217_v6  ;;  %v318_v9 = vld [vmem:[%s693_s4] ss:$0 sm:$0xff] }
  0x34   :  { %433 = vmatprep.subr.bf16.mxu0 %v567_v2  ;;  %454 = vmatprep.subr.bf16.mxu1 %v567_v2  ;;  %v319_v14 = vld [vmem:[%s695_s6] ss:$0 sm:$0xff] }
  0x37   :  { %435 = vmatpush3.bf16.msra.mxu0 %v434_v17  ;;  %456 = vmatpush3.bf16.msra.mxu1 %v455_v38 }
  0x38   :  { %436 = vmatprep.subr.bf16.mxu0 %v567_v2  ;;  %457 = vmatprep.subr.bf16.mxu1 %v567_v2 }
  0x3b   :  { %438 = vmatpush3.bf16.msra.mxu0 %v437_v21  ;;  %459 = vmatpush3.bf16.msra.mxu1 %v458_v42 }
  0x3c   :  { %439 = vmatprep.subr.bf16.mxu0 %v567_v2  ;;  %460 = vmatprep.subr.bf16.mxu1 %v567_v2 }
  0x3f   :  { %441 = vmatpush3.bf16.msra.mxu0 %v440_v27  ;;  %462 = vmatpush3.bf16.msra.mxu1 %v461_v45 }
  0x40   :  { %442 = vmatprep.subr.bf16.mxu0 %v567_v2  ;;  %463 = vmatprep.subr.bf16.mxu1 %v567_v2 }
  0x43   :  { %444 = vmatpush3.bf16.msra.mxu0 %v443_v35  ;;  %465 = vmatpush3.bf16.msra.mxu1 %v464_v48 }
  0x44   :  { %445 = vmatprep.subr.bf16.mxu0 %v567_v2  ;;  %466 = vmatprep.subr.bf16.mxu1 %v567_v2 }
  0x47   :  { %447 = vmatpush3.bf16.msra.mxu0 %v446_v41  ;;  %468 = vmatpush3.bf16.msra.mxu1 %v467_v51 }
  0x48   :  { %469 = vmatprep.subr.bf16.mxu1 %v567_v2  ;;  %v317_v2 = vld [vmem:[%s691_s2] ss:$0 sm:$0xff]  ;;  %s572_s2 = smov [#allocation7]  }
  0x49   :  { %s303_s16 = sshll.u32 %s572_s2, 4  ;;  %s304_s16 = int_to_ptr.vmem [resolvable:$true] %s303_s16 }
  0x4a   :  { %s533_s17 = scalar_lea.vmem %s304_s16, 128  ;;  %p538_p3 = scmp.lt.s32.totalorder %s304_s16, %s304_s16 }
  0x4b   :  { %471 = vmatpush3.bf16.msra.mxu1 %v470_v8  ;;  %p534_p2 = scmp.ne.s32.totalorder %s304_s16, %s533_s17  ;;  %p539_p4 = scmp.lt.s32.totalorder %s533_s17, %s533_s17 }
  0x4d   :  { %p540_p5 = por %p539_p4, %p538_p3 }
  0x4f   :  { %p541_p6 = pnand %p540_p5, %p534_p2 }
  0xa8   :  { %v60_v52 = vpop.permute.xlu0 %59  ;;  %v81_v53 = vpop.permute.xlu1 %80 }
  0xa9   :  { %v66_v60 = vmul.f32 %v313_v54, %v60_v52  ;;  %v87_v62 = vmul.f32 %v315_v56, %v81_v53 }
  0xad   :  { %v70_v57 = vpop.permute.xlu0 %69  ;;  %v92_v59 = vpop.permute.xlu1 %91 }
  0xae   :  { %v76_v61 = vmul.f32 %v314_v55, %v70_v57  ;;  %v98_v0 = vmul.f32 %v316_v58, %v92_v59 }
  0xb0   :  { %v77_v63 = vadd.f32 %v76_v61, %v66_v60 }
  0xb2   :  { %v88_v1 = vadd.f32 %v87_v62, %v77_v63 }
  0xb4   :  { %v99_v3 = vadd.f32 %v98_v0, %v88_v1 }
  0xb6   :  { %v107_v4 = vadd.f32 %v317_v2, %v99_v3 }
  0xb8   :  { %v108_v5 = vmax.f32 %v107_v4, 0.0 }
  0xba   :  { %387 = vmatmul.mubr.f32.vlgmr.msra.gmra.mrb[0].mxu0 %v108_v5 }
 0x18d   :  { %v198_v10 = vpop.f32.mrb[0].mxu0 }
 0x18e   :  { %v199_v11 = vadd.f32 %v318_v9, %v198_v10  ;;  %v388_v12 = vpop.f32.mrb[1].mxu0 }
 0x190   :  { %v202_v13 = vmax.f32 %v199_v11, 0.0 }
 0x192   :  { %422 = vmatmul.mubr.f32.vlgmr.msra.gmra.mrb[0].mxu1 %v202_v13 }
 0x265   :  { %v292_v15 = vpop.f32.mrb[0].mxu1 }
 0x266   :  { %v293_v16 = vadd.f32 %v319_v14, %v292_v15  ;;  %v423_v17 = vpop.f32.mrb[1].mxu1 }
 0x268   :  { %296 = vst [vmem:[#allocation7] sm:$0xff] %v293_v16 }
 0x269   :  { %544 = shalt.err (!%p541_p6)
}
 0x26a   :  { %s545_s19 = scalar_lea.hbm %s696_s7, 128 }
 0x26b   :  { %p546_p7 = scmp.ne.s32.totalorder %s696_s7, %s545_s19  ;;  %p549_p8 = scmp.lt.u32.totalorder %s545_s19, %s696_s7 }
 0x26d   :  { %p551_p9 = pnand %p549_p8, %p546_p7 }
 0x26f   :  { %554 = shalt.err (!%p551_p9)
}
 0x270   :  { %306 = dma.vmem_to_hbm [thread:$0]  %s304_s16, 128, %s696_s7, [#allocation4]  }
 0x271   :  { %559 = dma.done.wait [#allocation4], 128  }
 0x272   :  { %560 = vsyncadd [#allocation4], 4294967168 }
 0x273   :  { %310 = vsyncpa [#allocation3], 1 }
 0x274   :  { %311 = vsyncpa [#allocation6], 1 }
 0x275   :  { %312 = vsyncpa [#allocation4], 1 }

</bundles_post_ra>
